<compile_context>
chip_gen: v7x
topology: tpu7x:2x2x1
jax: 0.10.0
libtpu: 0.0.40
codegen_flags: <defaults>
</compile_context>

<pallas_src>
import functools

import jax
import jax.numpy as jnp
from jax.experimental import pallas as pl
from jax.experimental.pallas import tpu as pltpu


def _cdiv(a: int, b: int) -> int:
    return -(-a // b)


def _round_up(x: int, m: int) -> int:
    return _cdiv(x, m) * m


def _even_split(total: int, max_block: int, align: int):
    """Split `total` into n equal blocks, each a multiple of `align`,
    each <= round_up(max_block, align).  Returns (block, padded_total, n)."""
    total_a = _round_up(total, align)
    cap = _round_up(min(max_block, total_a), align)
    n = _cdiv(total_a, cap)
    blk = _round_up(_cdiv(total_a, n), align)
    return blk, n * blk, n


# ---------------------------------------------------------------------------
# Kernels
# ---------------------------------------------------------------------------

def _mod_kernel_single_k(x_ref, w_ref, b_ref, o_ref, *, is_last: bool):
    # x_ref: (tb, K_p)  w_ref: (K_p, tn)  b_ref: (1, tn)  o_ref: (tb, tn)
    y = jnp.dot(x_ref[...], w_ref[...], preferred_element_type=jnp.float32)
    y = y + b_ref[...]                    # f32 bias broadcast over rows
    if not is_last:
        y = jnp.maximum(y, 0.0)
    o_ref[...] = y.astype(o_ref.dtype)


def _mod_kernel_multi_k(x_ref, w_ref, b_ref, o_ref, acc_ref, *, is_last: bool):
    # x_ref: (tb, tk)  w_ref: (tk, tn)  b_ref: (1, tn)  o/acc: (tb, tn)
    k = pl.program_id(2)

    @pl.when(k == 0)
    def _():
        acc_ref[...] = jnp.zeros_like(acc_ref)

    acc_ref[...] += jnp.dot(x_ref[...], w_ref[...],
                            preferred_element_type=jnp.float32)

    @pl.when(k == pl.num_programs(2) - 1)
    def _():
        y = acc_ref[...] + b_ref[...]
        if not is_last:
            y = jnp.maximum(y, 0.0)
        o_ref[...] = y.astype(o_ref.dtype)


# ---------------------------------------------------------------------------
# Layer wrapper (parameters prepared once, reused every call)
# ---------------------------------------------------------------------------

class ModulationLayerTPU:
    """Pallas TPU equivalent of ModulationLayer (Linear + optional ReLU).

    weight: (out_f, in_f) in the PyTorch nn.Linear convention.
    Weight cast / transpose / pad happens once at construction time.
    """

    def __init__(self, weight, bias, *, is_last: bool = False,
                 block_b: int = 512, block_n: int = 256, block_k: int = 1024,
                 compute_dtype=jnp.bfloat16, prefer_split_n: bool = True):
        out_f, in_f = weight.shape
        assert bias.shape == (out_f,)
        self.in_f, self.out_f = in_f, out_f
        self.is_last = bool(is_last)
        self.block_b = int(block_b)
        self.compute_dtype = compute_dtype

        # N (out-feature) tiling — expose >= 2 blocks when possible (v7x: 2 TCs).
        tn, N_p, n_n = _even_split(out_f, block_n, 128)
        if prefer_split_n and n_n == 1 and N_p >= 256:
            tn, N_p, n_n = _even_split(out_f, N_p // 2, 128)
        # K (in-feature) tiling.
        tk, K_p, n_k = _even_split(in_f, block_k, 128)
        self.tn, self.N_p = tn, N_p
        self.tk, self.K_p, self.n_k = tk, K_p, n_k

        # One-time weight prep: cast -> transpose to (K, N) -> zero-pad.
        w_t = weight
        if compute_dtype is not None:
            w_t = w_t.astype(compute_dtype)
        w_t = w_t.T                                       # (in_f, out_f)
        if (K_p, N_p) != (in_f, out_f):
            w_t = jnp.pad(w_t, ((0, K_p - in_f), (0, N_p - out_f)))
        self.w_p = w_t

        b_f32 = bias.astype(jnp.float32)
        if N_p != out_f:
            b_f32 = jnp.pad(b_f32, (0, N_p - out_f))
        self.b_p = b_f32.reshape(1, N_p)

    def __call__(self, x):
        B, in_f = x.shape
        assert in_f == self.in_f
        out_dtype = x.dtype

        if self.compute_dtype is not None and x.dtype != self.compute_dtype:
            x = x.astype(self.compute_dtype)
        cdt = x.dtype
        cbytes = jnp.dtype(cdt).itemsize
        obytes = jnp.dtype(out_dtype).itemsize

        # Batch tiling: sublane-packed alignment for the compute dtype.
        align_b = {1: 32, 2: 16}.get(cbytes, 8)
        tb, B_p, n_b = _even_split(B, self.block_b, align_b)

        if (B_p, self.K_p) != (B, in_f):
            x = jnp.pad(x, ((0, B_p - B), (0, self.K_p - in_f)))

        tn, N_p = self.tn, self.N_p
        tk, K_p, n_k = self.tk, self.K_p, self.n_k
        single_k = (n_k == 1)

        cost = pl.CostEstimate(
            flops=2 * B_p * K_p * N_p,
            transcendentals=0,
            bytes_accessed=(B_p * K_p * cbytes + K_p * N_p * cbytes
                            + N_p * 4 + B_p * N_p * obytes))

        if single_k:
            kernel = functools.partial(_mod_kernel_single_k, is_last=self.is_last)
            grid = (n_b, N_p // tn)
            in_specs = [
                pl.BlockSpec((tb, K_p), lambda i, j: (i, 0)),   # x tile
                pl.BlockSpec((K_p, tn), lambda i, j: (0, j)),   # W tile (K, N)
                pl.BlockSpec((1, tn), lambda i, j: (0, j)),     # bias tile
            ]
            out_specs = pl.BlockSpec((tb, tn), lambda i, j: (i, j))
            scratch_shapes = ()
            dim_sem = ("parallel", "parallel")
            foot = (2 * (tb * K_p + K_p * tn) * cbytes
                    + 2 * tb * tn * obytes + 2 * tn * 4)
        else:
            kernel = functools.partial(_mod_kernel_multi_k, is_last=self.is_last)
            grid = (n_b, N_p // tn, n_k)
            in_specs = [
                pl.BlockSpec((tb, tk), lambda i, j, k: (i, k)),
                pl.BlockSpec((tk, tn), lambda i, j, k: (k, j)),
                pl.BlockSpec((1, tn), lambda i, j, k: (0, j)),
            ]
            out_specs = pl.BlockSpec((tb, tn), lambda i, j, k: (i, j))
            scratch_shapes = (pltpu.VMEM((tb, tn), jnp.float32),)
            dim_sem = ("parallel", "parallel", "arbitrary")
            foot = (2 * (tb * tk + tk * tn) * cbytes
                    + 2 * tb * tn * obytes + 2 * tn * 4 + tb * tn * 4)

        # Explicit VMEM budget: headroom over double-buffered footprint,
        # capped well under v7x's 64 MiB physical VMEM.
        vmem_limit = int(min(48 * 2**20, max(2 * foot, 24 * 2**20)))

        out = pl.pallas_call(
            kernel,
            out_shape=jax.ShapeDtypeStruct((B_p, N_p), out_dtype),
            grid_spec=pltpu.PrefetchScalarGridSpec(
                num_scalar_prefetch=0,
                grid=grid,
                in_specs=in_specs,
                out_specs=out_specs,
                scratch_shapes=scratch_shapes),
            compiler_params=pltpu.CompilerParams(
                dimension_semantics=dim_sem,
                vmem_limit_bytes=vmem_limit),
            cost_estimate=cost,
        )(x, self.w_p, self.b_p)

        if (B_p, N_p) != (B, self.out_f):
            out = out[:B, :self.out_f]
        return out


def modulation_layer(x, weight, bias, *, is_last: bool = False, **kwargs):
    """Functional convenience wrapper (re-prepares weight every call; prefer
    constructing ModulationLayerTPU once and reusing it)."""
    return ModulationLayerTPU(weight, bias, is_last=is_last, **kwargs)(x)


# ---------------------------------------------------------------------------
# Reference + test
# ---------------------------------------------------------------------------

def _reference(x, weight, bias, is_last):
    y = x @ weight.T + bias
    return y if is_last else jnp.maximum(y, 0.0)


def _make_params(kw, kb, in_f, out_f):
    bound = float(in_f) ** -0.5
    w = jax.random.uniform(kw, (out_f, in_f), jnp.float32, -bound, bound)
    b = jax.random.uniform(kb, (out_f,), jnp.float32, -bound, bound)
    return w, b


if __name__ == "__main__":
    key = jax.random.PRNGKey(0)
    ks = jax.random.split(key, 9)

    # --- primary shapes (typical small ModulationLayer) ----------------------
    B, in_f, out_f = 8, 32, 32
    x = jax.random.normal(ks[0], (B, in_f), dtype=jnp.float32)
    w, b = _make_params(ks[1], ks[2], in_f, out_f)

    # f32 path (bit-accurate), hidden layer (ReLU) and last layer (no ReLU)
    layer_f32 = ModulationLayerTPU(w, b, is_last=False, compute_dtype=None)
    y = jax.block_until_ready(layer_f32(x))
    assert jnp.allclose(y, _reference(x, w, b, False), atol=1e-5, rtol=1e-5)

    layer_f32_last = ModulationLayerTPU(w, b, is_last=True, compute_dtype=None)
    y_last = jax.block_until_ready(layer_f32_last(x))
    assert jnp.allclose(y_last, _reference(x, w, b, True), atol=1e-5, rtol=1e-5)

    # bf16 compute path (class default) — weight halved in HBM, f32 epilogue
    layer_bf16 = ModulationLayerTPU(w, b, is_last=False)
    y_bf16 = jax.block_until_ready(layer_bf16(x))
    assert y_bf16.dtype == x.dtype
    assert jnp.allclose(y_bf16, _reference(x, w, b, False), atol=5e-2, rtol=5e-2)

    # --- non-aligned shapes: exercises padding / edge handling ---------------
    B2, in_f2, out_f2 = 10, 40, 24
    x2 = jax.random.normal(ks[3], (B2, in_f2), dtype=jnp.float32)
    w2, b2 = _make_params(ks[4], ks[5], in_f2, out_f2)
    layer2 = ModulationLayerTPU(w2, b2, is_last=False, compute_dtype=None)
    y2 = jax.block_until_ready(layer2(x2))
    assert y2.shape == (B2, out_f2)
    assert jnp.allclose(y2, _reference(x2, w2, b2, False), atol=1e-5, rtol=1e-5)

    # --- large in_f: forces the 3-D (B, N, K) accumulator fallback path ------
    B3, in_f3, out_f3 = 16, 640, 48
    x3 = jax.random.normal(ks[6], (B3, in_f3), dtype=jnp.float32)
    w3, b3 = _make_params(ks[7], ks[8], in_f3, out_f3)
    layer3 = ModulationLayerTPU(w3, b3, is_last=False, compute_dtype=None,
                                block_k=256)
    assert layer3.n_k > 1  # really on the multi-K path
    y3 = jax.block_until_ready(layer3(x3))
    assert y3.shape == (B3, out_f3)
    assert jnp.allclose(y3, _reference(x3, w3, b3, False), atol=1e-2, rtol=1e-2)

    print("KERNEL_OK")
</pallas_src>

<mosaic_0001>
module attributes {stable_mosaic.version = 11 : i64} {
  func.func @_mod_kernel_single_k(%arg0: i32, %arg1: i32, %arg2: memref<8x128xf32, #tpu.memory_space<vmem>>, %arg3: memref<128x128xf32, #tpu.memory_space<vmem>>, %arg4: memref<1x128xf32, #tpu.memory_space<vmem>>, %arg5: memref<8x128xf32, #tpu.memory_space<vmem>>) attributes {dimension_semantics = [#tpu.dimension_semantics<parallel>, #tpu.dimension_semantics<parallel>], iteration_bounds = array<i64: 1, 1>, scalar_prefetch = 0 : i64, scratch_operands = 0 : i64, tpu.core_type = #tpu.core_type<tc>, window_params = [{transform_indices = @transform_0, window_bounds = array<i64: 8, 128>}, {transform_indices = @transform_1, window_bounds = array<i64: 128, 128>}, {transform_indices = @transform_2, window_bounds = array<i64: 1, 128>}, {transform_indices = @transform_3, window_bounds = array<i64: 8, 128>}]} {
    %c0 = arith.constant 0 : index
    %c0_0 = arith.constant 0 : index
    %0 = vector.load %arg2[%c0, %c0_0] : memref<8x128xf32, #tpu.memory_space<vmem>>, vector<8x128xf32>
    %c0_1 = arith.constant 0 : index
    %c0_2 = arith.constant 0 : index
    %1 = vector.load %arg3[%c0_1, %c0_2] : memref<128x128xf32, #tpu.memory_space<vmem>>, vector<128x128xf32>
    %cst = arith.constant dense<0.000000e+00> : vector<8x128xf32>
    %2 = tpu.matmul %0, %1, %cst {dimension_numbers = #tpu.dot_dimension_numbers<[1], [0], [0], [1], [0, 0, 1, 1], [], []>} : vector<8x128xf32>, vector<128x128xf32>, vector<8x128xf32> -> vector<8x128xf32>
    %c0_3 = arith.constant 0 : index
    %c0_4 = arith.constant 0 : index
    %3 = vector.load %arg4[%c0_3, %c0_4] : memref<1x128xf32, #tpu.memory_space<vmem>>, vector<1x128xf32>
    %4 = vector.broadcast %3 : vector<1x128xf32> to vector<8x128xf32>
    %5 = arith.addf %2, %4 : vector<8x128xf32>
    %cst_5 = arith.constant 0.000000e+00 : f32
    %6 = vector.broadcast %cst_5 : f32 to vector<8x128xf32>
    %7 = arith.maximumf %5, %6 : vector<8x128xf32>
    %c0_6 = arith.constant 0 : index
    %c0_7 = arith.constant 0 : index
    %8 = vector.load %arg5[%c0_6, %c0_7] : memref<8x128xf32, #tpu.memory_space<vmem>>, vector<8x128xf32>
    tpu.vector_store %arg5[%c0_6, %c0_7], %7 {strides = array<i32>} : memref<8x128xf32, #tpu.memory_space<vmem>>, vector<8x128xf32>,
    return
  }
  func.func @transform_0(%arg0: i32, %arg1: i32) -> (i32, i32) {
    %c0_i32 = arith.constant 0 : i32
    %c0_i32_0 = arith.constant 0 : i32
    return %arg0, %c0_i32 : i32, i32
  }
  func.func @transform_1(%arg0: i32, %arg1: i32) -> (i32, i32) {
    %c0_i32 = arith.constant 0 : i32
    %c0_i32_0 = arith.constant 0 : i32
    return %c0_i32, %arg1 : i32, i32
  }
  func.func @transform_2(%arg0: i32, %arg1: i32) -> (i32, i32) {
    %c0_i32 = arith.constant 0 : i32
    %c0_i32_0 = arith.constant 0 : i32
    return %c0_i32, %arg1 : i32, i32
  }
  func.func @transform_3(%arg0: i32, %arg1: i32) -> (i32, i32) {
    %c0_i32 = arith.constant 0 : i32
    return %arg0, %arg1 : i32, i32
  }
}

</mosaic_0001>

<bundles_post_ra>
// kernel: tpu_custom_call.1
= control target key start
LH: loop header
LB: loop body
LE: loop exit
PB: predicated region body
PF: predicated region fallthrough
CT: control target
= control target key end

     0   :  { %8 = vsyncpa [#allocation3], 0  ;;  %s384_s0 = inlined_call_operand.hbm [shape: f32[8,128], index: 0, kind: input, shape index: {}]   ;;  %s385_s1 = inlined_call_operand.hbm [shape: f32[128,128], index: 1, kind: input, shape index: {}]   ;;  %s386_s2 = inlined_call_operand.vmem [shape: f32[1,128], index: 2, kind: input, shape index: {}]   ;;  %s387_s3 = inlined_call_operand.hbm [shape: f32[8,128], index: 3, kind: output, shape index: {}]  }
   0x1   :  { %9 = vsyncpa [#allocation6], 0 }
   0x2   :  { %10 = vsyncpa [#allocation4], 0  ;;  %s310_s12 = smov [#allocation2]   ;;  %s311_s14 = smov [#allocation5]  }
   0x3   :  { %s17_s13 = sshll.u32 %s310_s12, 4  ;;  %s26_s15 = sshll.u32 %s311_s14, 4  ;;  %s18_s13 = int_to_ptr.vmem [resolvable:$true] %s17_s13  ;;  %s338_s15 = int_to_ptr.vmem [resolvable:$true] %s26_s15 }
   0x4   :  { %s238_s18 = scalar_lea.hbm %s384_s0, 128 }
   0x5   :  { %p239_p0 = scmp.ne.s32.totalorder %s384_s0, %s238_s18  ;;  %p242_p1 = scmp.lt.u32.totalorder %s238_s18, %s384_s0 }
   0x7   :  { %p244_p2 = pnand %p242_p1, %p239_p0 }
   0x9   :  { %247 = shalt.err (!%p244_p2)
}
   0xa   :  { %s248_s23 = scalar_lea.vmem %s18_s13, 128  ;;  %p253_p4 = scmp.lt.s32.totalorder %s18_s13, %s18_s13 }
   0xb   :  { %p249_p3 = scmp.ne.s32.totalorder %s18_s13, %s248_s23  ;;  %p254_p5 = scmp.lt.s32.totalorder %s248_s23, %s248_s23 }
   0xd   :  { %p255_p6 = por %p254_p5, %p253_p4 }
   0xf   :  { %p256_p7 = pnand %p255_p6, %p249_p3 }
  0x11   :  { %259 = shalt.err (!%p256_p7)
}
  0x12   :  { %20 = dma.hbm_to_vmem [thread:$0]  %s384_s0, 128, %s18_s13, [#allocation3]  }
  0x13   :  { %s260_s28 = scalar_lea.hbm %s385_s1, 2048 }
  0x14   :  { %p261_p8 = scmp.ne.s32.totalorder %s385_s1, %s260_s28  ;;  %p264_p9 = scmp.lt.u32.totalorder %s260_s28, %s385_s1 }
  0x16   :  { %p266_p10 = pnand %p264_p9, %p261_p8 }
  0x18   :  { %269 = shalt.err (!%p266_p10)
}
  0x19   :  { %s270_s6 = scalar_lea.vmem %s338_s15, 2048  ;;  %p275_p12 = scmp.lt.s32.totalorder %s338_s15, %s338_s15 }
  0x1a   :  { %p271_p11 = scmp.ne.s32.totalorder %s338_s15, %s270_s6  ;;  %p276_p13 = scmp.lt.s32.totalorder %s270_s6, %s270_s6 }
  0x1c   :  { %p277_p0 = por %p276_p13, %p275_p12 }
  0x1e   :  { %p278_p1 = pnand %p277_p0, %p271_p11 }
  0x20   :  { %281 = shalt.err (!%p278_p1)
}
  0x21   :  { %s312_s0 = smov 128   ;;  %s313_s7 = smov 8  }
  0x22   :  { %32 = dma.hbm_to_vmem [thread:$0]  %s385_s1, 2048, %s338_s15, [#allocation6], %s312_s0, %s312_s0, %s313_s7  }
  0x23   :  { %304 = dma.done.wait [#allocation3], 128  }
  0x24   :  { %305 = vsyncadd [#allocation3], 4294967168 }
  0x25   :  { %306 = dma.done.wait [#allocation6], 2048  }
  0x26   :  { %307 = vsyncadd [#allocation6], 4294965248  ;;  %v314_v0 = vmov 0.0|0.0   ;;  %vm315_vm0 = vmmov 0   ;;  %v316_v1 = vmov 0.0   ;;  %v42_v2 = vld [vmem:[#allocation5] sm:$0xff] }
  0x27   :  { %206 = vmatprep.subr.bf16.mxu0 %v314_v0  ;;  %203 = vmatprep.mubr.msk.f32.mxu0 %vm315_vm0, %v316_v1  ;;  %v43_v3 = vld [vmem:[#allocation5 + $0x8] sm:$0xff]  ;;  %v44_v4 = vld [vmem:[#allocation5 + $0x10] sm:$0xff]  ;;  %v45_v6 = vld [vmem:[#allocation5 + $0x18] sm:$0xff]  ;;  %s317_s11 = smov [#allocation7]  }
  0x28   :  { %v207_v5 = vpack.c.bf16 %v43_v3, %v42_v2  ;;  %v210_v7 = vpack.c.bf16 %v45_v6, %v44_v4  ;;  %v46_v8 = vld [vmem:[#allocation5 + $0x20] sm:$0xff]  ;;  %v47_v9 = vld [vmem:[#allocation5 + $0x28] sm:$0xff]  ;;  %v48_v11 = vld [vmem:[#allocation5 + $0x30] sm:$0xff]  ;;  %s143_s12 = sshll.u32 %s317_s11, 4  ;;  %s144_s12 = int_to_ptr.vmem [resolvable:$true] %s143_s12 }
  0x29   :  { %v213_v10 = vpack.c.bf16 %v47_v9, %v46_v8  ;;  %v49_v12 = vld [vmem:[#allocation5 + $0x38] sm:$0xff]  ;;  %v50_v14 = vld [vmem:[#allocation5 + $0x40] sm:$0xff]  ;;  %v51_v15 = vld [vmem:[#allocation5 + $0x48] sm:$0xff]  ;;  %s282_s13 = scalar_lea.vmem %s144_s12, 128  ;;  %p287_p3 = scmp.lt.s32.totalorder %s144_s12, %s144_s12 }
  0x2a   :  { %208 = vmatpush3.bf16.msra.mxu0 %v207_v5  ;;  %v216_v13 = vpack.c.bf16 %v49_v12, %v48_v11  ;;  %v219_v16 = vpack.c.bf16 %v51_v15, %v50_v14  ;;  %v52_v17 = vld [vmem:[#allocation5 + $0x50] sm:$0xff]  ;;  %v53_v18 = vld [vmem:[#allocation5 + $0x58] sm:$0xff]  ;;  %v54_v20 = vld [vmem:[#allocation5 + $0x60] sm:$0xff]  ;;  %p283_p2 = scmp.ne.s32.totalorder %s144_s12, %s282_s13  ;;  %p288_p4 = scmp.lt.s32.totalorder %s282_s13, %s282_s13 }
  0x2b   :  { %209 = vmatprep.subr.bf16.mxu0 %v314_v0  ;;  %v222_v19 = vpack.c.bf16 %v53_v18, %v52_v17  ;;  %v55_v21 = vld [vmem:[#allocation5 + $0x68] sm:$0xff]  ;;  %v56_v23 = vld [vmem:[#allocation5 + $0x70] sm:$0xff]  ;;  %v57_v24 = vld [vmem:[#allocation5 + $0x78] sm:$0xff] }
  0x2c   :  { %v225_v22 = vpack.c.bf16 %v55_v21, %v54_v20  ;;  %v228_v25 = vpack.c.bf16 %v57_v24, %v56_v23  ;;  %v41_v26 = vld [vmem:[#allocation2] sm:$0xff]  ;;  %p289_p5 = por %p288_p4, %p287_p3 }
  0x2d   :  { %v153_v27 = vld [vmem:[%s386_s2] ss:$0 sm:$0xff] }
  0x2e   :  { %211 = vmatpush3.bf16.msra.mxu0 %v210_v7  ;;  %p290_p6 = pnand %p289_p5, %p283_p2 }
  0x2f   :  { %212 = vmatprep.subr.bf16.mxu0 %v314_v0 }
  0x32   :  { %214 = vmatpush3.bf16.msra.mxu0 %v213_v10 }
  0x33   :  { %215 = vmatprep.subr.bf16.mxu0 %v314_v0 }
  0x36   :  { %217 = vmatpush3.bf16.msra.mxu0 %v216_v13 }
  0x37   :  { %218 = vmatprep.subr.bf16.mxu0 %v314_v0 }
  0x3a   :  { %220 = vmatpush3.bf16.msra.mxu0 %v219_v16 }
  0x3b   :  { %221 = vmatprep.subr.bf16.mxu0 %v314_v0 }
  0x3e   :  { %223 = vmatpush3.bf16.msra.mxu0 %v222_v19 }
  0x3f   :  { %224 = vmatprep.subr.bf16.mxu0 %v314_v0 }
  0x42   :  { %226 = vmatpush3.bf16.msra.mxu0 %v225_v22 }
  0x43   :  { %227 = vmatprep.subr.bf16.mxu0 %v314_v0 }
  0x46   :  { %229 = vmatpush3.bf16.msra.mxu0 %v228_v25 }
  0x49   :  { %204 = vmatmul.mubr.f32.vlgmr.msra.gmra.mrb[0].mxu0 %v41_v26 }
 0x11c   :  { %v131_v28 = vpop.f32.mrb[0].mxu0 }
 0x11d   :  { %v132_v29 = vadd.f32 %v153_v27, %v131_v28  ;;  %v205_v30 = vpop.f32.mrb[1].mxu0 }
 0x11f   :  { %v135_v31 = vmax.f32 %v132_v29, 0.0 }
 0x121   :  { %136 = vst [vmem:[#allocation7] sm:$0xff] %v135_v31 }
 0x122   :  { %293 = shalt.err (!%p290_p6)
}
 0x123   :  { %s294_s16 = scalar_lea.hbm %s387_s3, 128 }
 0x124   :  { %p295_p7 = scmp.ne.s32.totalorder %s387_s3, %s294_s16  ;;  %p298_p8 = scmp.lt.u32.totalorder %s294_s16, %s387_s3 }
 0x126   :  { %p300_p9 = pnand %p298_p8, %p295_p7 }
 0x128   :  { %303 = shalt.err (!%p300_p9)
}
 0x129   :  { %146 = dma.vmem_to_hbm [thread:$0]  %s144_s12, 128, %s387_s3, [#allocation4]  }
 0x12a   :  { %308 = dma.done.wait [#allocation4], 128  }
 0x12b   :  { %309 = vsyncadd [#allocation4], 4294967168 }
 0x12c   :  { %150 = vsyncpa [#allocation3], 1 }
 0x12d   :  { %151 = vsyncpa [#allocation6], 1 }
 0x12e   :  { %152 = vsyncpa [#allocation4], 1 }

</bundles_post_ra>
